<compile_context>
chip_gen: v7x
topology: tpu7x:2x2x1
jax: 0.10.0
libtpu: 0.0.40
codegen_flags: <defaults>
</compile_context>

<pallas_src>
import numpy as np
import jax
import jax.numpy as jnp
from jax.experimental import pallas as pl
from jax.experimental.pallas import tpu as pltpu


# ------------------------- parameter construction (host-side JAX glue) -------------------------

def _fft2_real_crop(K, size):
    w, h = size
    return jnp.real(jnp.fft.fft2(K))[:w, :h]


def gaussian_param(size, sigma=0.5):
    w, h = size
    K = jnp.zeros((2 * w, 2 * h), jnp.float32)
    g = jnp.array([[0.01133, 0.08373, 0.01133],
                   [0.08373, 0.61869, 0.08373],
                   [0.01133, 0.08373, 0.01133]], jnp.float32)
    K = K.at[:3, :3].set(g)
    K = jnp.roll(K, -1, 0)
    K = jnp.roll(K, -1, 1)
    return _fft2_real_crop(K, size)


def laplacian_param(size):
    w, h = size
    K = jnp.zeros((2 * w, 2 * h), jnp.float32)
    lap = jnp.array([[0, -1, 0], [-1, 4, -1], [0, -1, 0]], jnp.float32)
    K = K.at[:3, :3].set(lap)
    K = jnp.roll(K, -1, 0)
    K = jnp.roll(K, -1, 1)
    return _fft2_real_crop(K, size)


def dct_matrix(N):
    """Orthonormal DCT-II matrix D such that dct(x, norm='ortho') = D @ x."""
    n = jnp.arange(N, dtype=jnp.float32)
    k = jnp.arange(N, dtype=jnp.float32)[:, None]
    D = jnp.cos(jnp.pi * (2.0 * n + 1.0) * k / (2.0 * N)) * jnp.sqrt(2.0 / N)
    D = D.at[0, :].multiply(1.0 / jnp.sqrt(2.0))
    return D.astype(jnp.float32)


# ------------------------------------- Pallas kernel ---------------------------------------

def _make_gp_kernel(color_weight):
    # Python float -> lowered as a scalar literal (NOT a captured jax Array constant,
    # which was the previous compile failure).
    cw = float(color_weight)

    def gp_kernel(x_ref, l_ref, dh_ref, dht_ref, bd_dwt_ref, bd_dw_ref, ip_ref, o_ref):
        # x_ref / l_ref / o_ref : (1, H, TB*W) slabs (TB planes packed along lanes)
        # dh_ref  : (H, H)   orthonormal DCT-II matrix
        # dht_ref : (H, H)   its transpose (precomputed; no in-kernel transpose)
        # bd_dwt_ref / bd_dw_ref : (TB*W, TB*W) block-diagonal kron(I_TB, Dw^T) / kron(I_TB, Dw)
        # ip_ref  : (H, TB*W) 1/param_total tiled across planes (precomputed reciprocal)

        # linearity of the DCT: fold L + cw*X on the VPU, then a SINGLE forward DCT
        y = l_ref[0] + cw * x_ref[0]

        # row transform:    (H, H) @ (H, TB*W)          -- N >= 128, MXU-friendly
        a = jnp.dot(dh_ref[...], y, preferred_element_type=jnp.float32)
        # column transform: (H, TB*W) @ blockdiag(Dw^T) -- per-plane A @ Dw^T, no transposes
        b = jnp.dot(a, bd_dwt_ref[...], preferred_element_type=jnp.float32)

        # Gaussian-Poisson solve in DCT space (multiply by precomputed reciprocal)
        c = b * ip_ref[...]

        # inverse 2D DCT: Dh^T @ C @ Dw  (both operands pre-transposed / block-diag)
        d = jnp.dot(dht_ref[...], c, preferred_element_type=jnp.float32)
        e = jnp.dot(d, bd_dw_ref[...], preferred_element_type=jnp.float32)

        o_ref[0] = jnp.clip(e, 0.0, 255.0)

    return gp_kernel


def _choose_grid(num_planes, w):
    """Pick G grid blocks (TB = num_planes // G planes per block).

    Preference:
      1. lane-dense per-block width ((TB*W) % 128 == 0): unmasked stores + wide MXU N
      2. G >= 2 so both v7x TensorCores get work on the 'parallel' axis
      3. fewest grid steps (per-step overhead on single-TC v5e/v6e)
    """
    divisors = [g for g in range(1, num_planes + 1) if num_planes % g == 0]

    def score(g):
        tb = num_planes // g
        lane_dense = (tb * w) % 128 == 0
        return (lane_dense, g >= 2, -g)

    return max(divisors, key=score)


class GPModelT2Pallas:
    """Pallas TPU implementation of GP_model_T2.forward."""

    def __init__(self, img_shape, color_weight=8e-10, sigma=0.5, eps=1e-12):
        H, W = int(img_shape[-2]), int(img_shape[-1])
        self.H, self.W = H, W
        self.color_weight = float(color_weight)

        param_l = laplacian_param((H, W))
        param_g = gaussian_param((H, W), sigma)
        pt = param_l + self.color_weight * param_g
        pt = jnp.where((pt >= 0) & (pt < eps), eps, pt)
        pt = jnp.where((pt < 0) & (pt > -eps), -eps, pt)
        self.param_total = pt.astype(jnp.float32)
        # precompute reciprocal host-side -> in-kernel multiply instead of divide
        self.inv_param = (1.0 / self.param_total).astype(jnp.float32)

        self.dct_h = dct_matrix(H)                      # (H, H)
        self.dct_w = dct_matrix(W)                      # (W, W)
        self.dct_h_t = jnp.asarray(self.dct_h.T)        # precomputed transpose

        self._kernel = _make_gp_kernel(self.color_weight)
        self._plans = {}

    def _plan(self, BC):
        # NOTE: block-diagonal column transform is sized for small/medium W;
        # for very large W one would fall back to per-plane (TB*H, W) @ Dw^T matmuls
        # and re-derive TB against the per-generation VMEM budget (v7x: 64 MiB phys).
        if BC not in self._plans:
            G = _choose_grid(BC, self.W)
            TB = BC // G
            LW = TB * self.W
            eye = jnp.eye(TB, dtype=jnp.float32)
            bd_dwt = jnp.kron(eye, self.dct_w.T).astype(jnp.float32)   # (LW, LW)
            bd_dw = jnp.kron(eye, self.dct_w).astype(jnp.float32)      # (LW, LW)
            inv_tiled = jnp.tile(self.inv_param, (1, TB))              # (H, LW)
            self._plans[BC] = (G, TB, LW, bd_dwt, bd_dw, inv_tiled)
        return self._plans[BC]

    def __call__(self, X, L):
        B, C, H, W = X.shape
        assert (H, W) == (self.H, self.W)
        BC = B * C
        G, TB, LW, bd_dwt, bd_dw, inv_tiled = self._plan(BC)

        def to_slab(a):
            # (B,C,H,W) -> (G, H, TB*W): slab[g, h, p*W + w] = plane[g*TB + p][h, w]
            a = a.astype(jnp.float32).reshape(G, TB, H, W)
            return a.transpose(0, 2, 1, 3).reshape(G, H, LW)

        x = to_slab(X)
        l = to_slab(L)

        out = pl.pallas_call(
            self._kernel,
            out_shape=jax.ShapeDtypeStruct((G, H, LW), jnp.float32),
            grid_spec=pltpu.PrefetchScalarGridSpec(
                num_scalar_prefetch=0,
                grid=(G,),
                in_specs=[
                    pl.BlockSpec((1, H, LW), lambda g: (g, 0, 0)),   # X slab
                    pl.BlockSpec((1, H, LW), lambda g: (g, 0, 0)),   # L slab
                    pl.BlockSpec((H, H), lambda g: (0, 0)),          # Dh
                    pl.BlockSpec((H, H), lambda g: (0, 0)),          # Dh^T
                    pl.BlockSpec((LW, LW), lambda g: (0, 0)),        # blockdiag(Dw^T)
                    pl.BlockSpec((LW, LW), lambda g: (0, 0)),        # blockdiag(Dw)
                    pl.BlockSpec((H, LW), lambda g: (0, 0)),         # 1/param tiled
                ],
                out_specs=pl.BlockSpec((1, H, LW), lambda g: (g, 0, 0)),
            ),
            compiler_params=pltpu.CompilerParams(
                dimension_semantics=("parallel",)),
        )(x, l, self.dct_h, self.dct_h_t, bd_dwt, bd_dw, inv_tiled)

        # (G, H, TB*W) -> (B, C, H, W)
        out = out.reshape(G, H, TB, W).transpose(0, 2, 1, 3).reshape(B, C, H, W)
        return out


# ------------------------------------- reference (plain JAX) -------------------------------

def _reference_forward(model, X, L):
    Dh, Dw, pt, cw = model.dct_h, model.dct_w, model.param_total, model.color_weight

    def dct2(a):
        return jnp.einsum('ij,bcjk,lk->bcil', Dh, a, Dw)

    def idct2(a):
        return jnp.einsum('ji,bcjk,kl->bcil', Dh, a, Dw)

    Xdct = dct2(X.astype(jnp.float32))
    Ydct = (dct2(L.astype(jnp.float32)) + cw * Xdct) / pt
    return jnp.clip(idct2(Ydct), 0.0, 255.0)


# ---------------------------------------------- main ---------------------------------------

if __name__ == "__main__":
    B, C, H, W = 2, 4, 16, 16
    key = jax.random.PRNGKey(0)
    kx, kl = jax.random.split(key)
    X = jax.random.uniform(kx, (B, C, H, W), jnp.float32, 0.0, 255.0)
    L = jax.random.normal(kl, (B, C, H, W), jnp.float32) * 10.0

    model = GPModelT2Pallas((B, C, H, W))
    out = jax.block_until_ready(model(X, L))

    ref = jax.block_until_ready(_reference_forward(model, X, L))
    np.testing.assert_allclose(np.asarray(out), np.asarray(ref), rtol=1e-4, atol=1e-2)

    print("KERNEL_OK")
</pallas_src>

<mosaic_0001>
module attributes {stable_mosaic.version = 11 : i64} {
  func.func @gp_kernel(%arg0: i32, %arg1: memref<1x16x128xf32, #tpu.memory_space<vmem>>, %arg2: memref<1x16x128xf32, #tpu.memory_space<vmem>>, %arg3: memref<16x16xf32, #tpu.memory_space<vmem>>, %arg4: memref<16x16xf32, #tpu.memory_space<vmem>>, %arg5: memref<128x128xf32, #tpu.memory_space<vmem>>, %arg6: memref<128x128xf32, #tpu.memory_space<vmem>>, %arg7: memref<16x128xf32, #tpu.memory_space<vmem>>, %arg8: memref<1x16x128xf32, #tpu.memory_space<vmem>>) attributes {dimension_semantics = [#tpu.dimension_semantics<parallel>], iteration_bounds = array<i64: 1>, scalar_prefetch = 0 : i64, scratch_operands = 0 : i64, tpu.core_type = #tpu.core_type<tc>, window_params = [{transform_indices = @transform_0, window_bounds = array<i64: 1, 16, 128>}, {transform_indices = @transform_1, window_bounds = array<i64: 1, 16, 128>}, {pipeline_mode = #tpu.pipeline_mode<synchronous>, transform_indices = @transform_2, window_bounds = array<i64: 16, 16>}, {pipeline_mode = #tpu.pipeline_mode<synchronous>, transform_indices = @transform_3, window_bounds = array<i64: 16, 16>}, {pipeline_mode = #tpu.pipeline_mode<synchronous>, transform_indices = @transform_4, window_bounds = array<i64: 128, 128>}, {pipeline_mode = #tpu.pipeline_mode<synchronous>, transform_indices = @transform_5, window_bounds = array<i64: 128, 128>}, {pipeline_mode = #tpu.pipeline_mode<synchronous>, transform_indices = @transform_6, window_bounds = array<i64: 16, 128>}, {transform_indices = @transform_7, window_bounds = array<i64: 1, 16, 128>}]} {
    %c0 = arith.constant 0 : index
    %c0_0 = arith.constant 0 : index
    %c0_1 = arith.constant 0 : index
    %0 = vector.load %arg2[%c0, %c0_0, %c0_1] : memref<1x16x128xf32, #tpu.memory_space<vmem>>, vector<1x16x128xf32>
    %1 = vector.shape_cast %0 : vector<1x16x128xf32> to vector<16x128xf32>
    %c0_2 = arith.constant 0 : index
    %c0_3 = arith.constant 0 : index
    %c0_4 = arith.constant 0 : index
    %2 = vector.load %arg1[%c0_2, %c0_3, %c0_4] : memref<1x16x128xf32, #tpu.memory_space<vmem>>, vector<1x16x128xf32>
    %3 = vector.shape_cast %2 : vector<1x16x128xf32> to vector<16x128xf32>
    %cst = arith.constant 8.000000e-10 : f32
    %4 = vector.broadcast %cst : f32 to vector<16x128xf32>
    %5 = arith.mulf %4, %3 : vector<16x128xf32>
    %6 = arith.addf %1, %5 : vector<16x128xf32>
    %c0_5 = arith.constant 0 : index
    %c0_6 = arith.constant 0 : index
    %7 = vector.load %arg3[%c0_5, %c0_6] : memref<16x16xf32, #tpu.memory_space<vmem>>, vector<16x16xf32>
    %cst_7 = arith.constant dense<0.000000e+00> : vector<16x128xf32>
    %8 = tpu.matmul %7, %6, %cst_7 {dimension_numbers = #tpu.dot_dimension_numbers<[1], [0], [0], [1], [0, 0, 1, 1], [], []>} : vector<16x16xf32>, vector<16x128xf32>, vector<16x128xf32> -> vector<16x128xf32>
    %c0_8 = arith.constant 0 : index
    %c0_9 = arith.constant 0 : index
    %9 = vector.load %arg5[%c0_8, %c0_9] : memref<128x128xf32, #tpu.memory_space<vmem>>, vector<128x128xf32>
    %cst_10 = arith.constant dense<0.000000e+00> : vector<16x128xf32>
    %10 = tpu.matmul %8, %9, %cst_10 {dimension_numbers = #tpu.dot_dimension_numbers<[1], [0], [0], [1], [0, 0, 1, 1], [], []>} : vector<16x128xf32>, vector<128x128xf32>, vector<16x128xf32> -> vector<16x128xf32>
    %c0_11 = arith.constant 0 : index
    %c0_12 = arith.constant 0 : index
    %11 = vector.load %arg7[%c0_11, %c0_12] : memref<16x128xf32, #tpu.memory_space<vmem>>, vector<16x128xf32>
    %12 = arith.mulf %10, %11 : vector<16x128xf32>
    %c0_13 = arith.constant 0 : index
    %c0_14 = arith.constant 0 : index
    %13 = vector.load %arg4[%c0_13, %c0_14] : memref<16x16xf32, #tpu.memory_space<vmem>>, vector<16x16xf32>
    %cst_15 = arith.constant dense<0.000000e+00> : vector<16x128xf32>
    %14 = tpu.matmul %13, %12, %cst_15 {dimension_numbers = #tpu.dot_dimension_numbers<[1], [0], [0], [1], [0, 0, 1, 1], [], []>} : vector<16x16xf32>, vector<16x128xf32>, vector<16x128xf32> -> vector<16x128xf32>
    %c0_16 = arith.constant 0 : index
    %c0_17 = arith.constant 0 : index
    %15 = vector.load %arg6[%c0_16, %c0_17] : memref<128x128xf32, #tpu.memory_space<vmem>>, vector<128x128xf32>
    %cst_18 = arith.constant dense<0.000000e+00> : vector<16x128xf32>
    %16 = tpu.matmul %14, %15, %cst_18 {dimension_numbers = #tpu.dot_dimension_numbers<[1], [0], [0], [1], [0, 0, 1, 1], [], []>} : vector<16x128xf32>, vector<128x128xf32>, vector<16x128xf32> -> vector<16x128xf32>
    %cst_19 = arith.constant 0.000000e+00 : f32
    %cst_20 = arith.constant 2.550000e+02 : f32
    %17 = vector.broadcast %cst_19 : f32 to vector<16x128xf32>
    %18 = arith.maximumf %17, %16 : vector<16x128xf32>
    %19 = vector.broadcast %cst_20 : f32 to vector<16x128xf32>
    %20 = arith.minimumf %19, %18 : vector<16x128xf32>
    %c0_21 = arith.constant 0 : index
    %c0_22 = arith.constant 0 : index
    %c0_23 = arith.constant 0 : index
    %21 = vector.load %arg8[%c0_21, %c0_22, %c0_23] : memref<1x16x128xf32, #tpu.memory_space<vmem>>, vector<1x16x128xf32>
    %22 = vector.shape_cast %21 : vector<1x16x128xf32> to vector<16x128xf32>
    %23 = vector.shape_cast %20 : vector<16x128xf32> to vector<1x16x128xf32>
    tpu.vector_store %arg8[%c0_21, %c0_22, %c0_23], %23 {strides = array<i32>} : memref<1x16x128xf32, #tpu.memory_space<vmem>>, vector<1x16x128xf32>,
    return
  }
  func.func @transform_0(%arg0: i32) -> (i32, i32, i32) {
    %c0_i32 = arith.constant 0 : i32
    %c0_i32_0 = arith.constant 0 : i32
    %c0_i32_1 = arith.constant 0 : i32
    return %arg0, %c0_i32, %c0_i32_0 : i32, i32, i32
  }
  func.func @transform_1(%arg0: i32) -> (i32, i32, i32) {
    %c0_i32 = arith.constant 0 : i32
    %c0_i32_0 = arith.constant 0 : i32
    %c0_i32_1 = arith.constant 0 : i32
    return %arg0, %c0_i32, %c0_i32_0 : i32, i32, i32
  }
  func.func @transform_2(%arg0: i32) -> (i32, i32) {
    %c0_i32 = arith.constant 0 : i32
    %c0_i32_0 = arith.constant 0 : i32
    %c0_i32_1 = arith.constant 0 : i32
    return %c0_i32, %c0_i32_0 : i32, i32
  }
  func.func @transform_3(%arg0: i32) -> (i32, i32) {
    %c0_i32 = arith.constant 0 : i32
    %c0_i32_0 = arith.constant 0 : i32
    %c0_i32_1 = arith.constant 0 : i32
    return %c0_i32, %c0_i32_0 : i32, i32
  }
  func.func @transform_4(%arg0: i32) -> (i32, i32) {
    %c0_i32 = arith.constant 0 : i32
    %c0_i32_0 = arith.constant 0 : i32
    %c0_i32_1 = arith.constant 0 : i32
    return %c0_i32, %c0_i32_0 : i32, i32
  }
  func.func @transform_5(%arg0: i32) -> (i32, i32) {
    %c0_i32 = arith.constant 0 : i32
    %c0_i32_0 = arith.constant 0 : i32
    %c0_i32_1 = arith.constant 0 : i32
    return %c0_i32, %c0_i32_0 : i32, i32
  }
  func.func @transform_6(%arg0: i32) -> (i32, i32) {
    %c0_i32 = arith.constant 0 : i32
    %c0_i32_0 = arith.constant 0 : i32
    %c0_i32_1 = arith.constant 0 : i32
    return %c0_i32, %c0_i32_0 : i32, i32
  }
  func.func @transform_7(%arg0: i32) -> (i32, i32, i32) {
    %c0_i32 = arith.constant 0 : i32
    %c0_i32_0 = arith.constant 0 : i32
    %c0_i32_1 = arith.constant 0 : i32
    return %arg0, %c0_i32, %c0_i32_0 : i32, i32, i32
  }
}

</mosaic_0001>

<bundles_post_ra>
// kernel: tpu_custom_call.1
= control target key start
LH: loop header
LB: loop body
LE: loop exit
PB: predicated region body
PF: predicated region fallthrough
CT: control target
= control target key end

     0   :  { %12 = vsyncpa [#allocation3], 0  ;;  %s1058_s0 = inlined_call_operand.hbm [shape: f32[1,16,128], index: 0, kind: input, shape index: {}]   ;;  %s1059_s1 = inlined_call_operand.hbm [shape: f32[1,16,128], index: 1, kind: input, shape index: {}]   ;;  %s1060_s2 = inlined_call_operand.hbm [shape: f32[16,16], index: 2, kind: input, shape index: {}]   ;;  %s1061_s3 = inlined_call_operand.hbm [shape: f32[16,16], index: 3, kind: input, shape index: {}]   ;;  %s1062_s4 = inlined_call_operand.hbm [shape: f32[128,128], index: 4, kind: input, shape index: {}]   ;;  %s1063_s5 = inlined_call_operand.hbm [shape: f32[128,128], index: 5, kind: input, shape index: {}]   ;;  %s1064_s6 = inlined_call_operand.vmem [shape: f32[16,128], index: 6, kind: input, shape index: {}]   ;;  %s1065_s7 = inlined_call_operand.hbm [shape: f32[1,16,128], index: 7, kind: output, shape index: {}]  }
   0x1   :  { %13 = vsyncpa [#allocation6], 0 }
   0x2   :  { %14 = vsyncpa [#allocation9], 0 }
   0x3   :  { %15 = vsyncpa [#allocation12], 0 }
   0x4   :  { %16 = vsyncpa [#allocation4], 0  ;;  %s873_s24 = smov [#allocation5]   ;;  %s874_s26 = smov [#allocation8]  }
   0x5   :  { %s34_s25 = sshll.u32 %s873_s24, 4  ;;  %s58_s27 = sshll.u32 %s874_s26, 4  ;;  %s35_s25 = int_to_ptr.vmem [resolvable:$true] %s34_s25  ;;  %s922_s27 = int_to_ptr.vmem [resolvable:$true] %s58_s27 }
   0x6   :  { %s709_s30 = scalar_lea.hbm %s1059_s1, 256 }
   0x7   :  { %p710_p0 = scmp.ne.s32.totalorder %s1059_s1, %s709_s30  ;;  %p713_p1 = scmp.lt.u32.totalorder %s709_s30, %s1059_s1 }
   0x9   :  { %p715_p2 = pnand %p713_p1, %p710_p0 }
   0xb   :  { %718 = shalt.err (!%p715_p2)
}
   0xc   :  { %s719_s12 = scalar_lea.vmem %s35_s25, 256  ;;  %p724_p4 = scmp.lt.s32.totalorder %s35_s25, %s35_s25 }
   0xd   :  { %p720_p3 = scmp.ne.s32.totalorder %s35_s25, %s719_s12  ;;  %p725_p5 = scmp.lt.s32.totalorder %s719_s12, %s719_s12 }
   0xf   :  { %p726_p6 = por %p725_p5, %p724_p4 }
  0x11   :  { %p727_p7 = pnand %p726_p6, %p720_p3 }
  0x13   :  { %730 = shalt.err (!%p727_p7)
}
  0x14   :  { %s875_s13 = smov 128   ;;  %s876_s14 = smov 8  }
  0x15   :  { %40 = dma.hbm_to_vmem [thread:$0]  %s1059_s1, 256, %s35_s25, [#allocation6], %s875_s13, %s875_s13, %s876_s14  }
  0x16   :  { %s731_s19 = scalar_lea.hbm %s1061_s3, 256 }
  0x17   :  { %p732_p8 = scmp.ne.s32.totalorder %s1061_s3, %s731_s19  ;;  %p735_p9 = scmp.lt.u32.totalorder %s731_s19, %s1061_s3 }
  0x19   :  { %p737_p10 = pnand %p735_p9, %p732_p8 }
  0x1b   :  { %740 = shalt.err (!%p737_p10)
}
  0x1c   :  { %s741_s24 = scalar_lea.vmem %s922_s27, 256  ;;  %p746_p12 = scmp.lt.s32.totalorder %s922_s27, %s922_s27 }
  0x1d   :  { %p742_p11 = scmp.ne.s32.totalorder %s922_s27, %s741_s24  ;;  %p747_p13 = scmp.lt.s32.totalorder %s741_s24, %s741_s24 }
  0x1f   :  { %p748_p0 = por %p747_p13, %p746_p12 }
  0x21   :  { %p749_p1 = pnand %p748_p0, %p742_p11 }
  0x23   :  { %752 = shalt.err (!%p749_p1)
}
  0x24   :  { %64 = dma.hbm_to_vmem [thread:$0]  %s1061_s3, 256, %s922_s27, [#allocation9], %s875_s13, %s875_s13, %s876_s14  }
  0x25   :  { %s877_s26 = smov [#allocation2]   ;;  %s878_s29 = smov [#allocation7]  }
  0x26   :  { %s22_s28 = sshll.u32 %s877_s26, 4  ;;  %s46_s30 = sshll.u32 %s878_s29, 4  ;;  %s23_s28 = int_to_ptr.vmem [resolvable:$true] %s22_s28  ;;  %s959_s30 = int_to_ptr.vmem [resolvable:$true] %s46_s30 }
  0x27   :  { %s753_s10 = scalar_lea.hbm %s1058_s0, 256 }
  0x28   :  { %p754_p2 = scmp.ne.s32.totalorder %s1058_s0, %s753_s10  ;;  %p757_p3 = scmp.lt.u32.totalorder %s753_s10, %s1058_s0 }
  0x2a   :  { %p759_p4 = pnand %p757_p3, %p754_p2 }
  0x2c   :  { %762 = shalt.err (!%p759_p4)
}
  0x2d   :  { %s763_s3 = scalar_lea.vmem %s23_s28, 256  ;;  %p768_p6 = scmp.lt.s32.totalorder %s23_s28, %s23_s28 }
  0x2e   :  { %p764_p5 = scmp.ne.s32.totalorder %s23_s28, %s763_s3  ;;  %p769_p7 = scmp.lt.s32.totalorder %s763_s3, %s763_s3 }
  0x30   :  { %p770_p8 = por %p769_p7, %p768_p6 }
  0x32   :  { %p771_p9 = pnand %p770_p8, %p764_p5 }
  0x34   :  { %774 = shalt.err (!%p771_p9)
}
  0x35   :  { %28 = dma.hbm_to_vmem [thread:$0]  %s1058_s0, 256, %s23_s28, [#allocation3], %s875_s13, %s875_s13, %s876_s14  }
  0x36   :  { %s775_s20 = scalar_lea.hbm %s1060_s2, 256 }
  0x37   :  { %p776_p10 = scmp.ne.s32.totalorder %s1060_s2, %s775_s20  ;;  %p779_p11 = scmp.lt.u32.totalorder %s775_s20, %s1060_s2 }
  0x39   :  { %p781_p12 = pnand %p779_p11, %p776_p10 }
  0x3b   :  { %784 = shalt.err (!%p781_p12)
}
  0x3c   :  { %s785_s1 = scalar_lea.vmem %s959_s30, 256  ;;  %p790_p0 = scmp.lt.s32.totalorder %s959_s30, %s959_s30 }
  0x3d   :  { %p786_p13 = scmp.ne.s32.totalorder %s959_s30, %s785_s1  ;;  %p791_p1 = scmp.lt.s32.totalorder %s785_s1, %s785_s1 }
  0x3f   :  { %p792_p2 = por %p791_p1, %p790_p0 }
  0x41   :  { %p793_p3 = pnand %p792_p2, %p786_p13 }
  0x43   :  { %796 = shalt.err (!%p793_p3)
}
  0x44   :  { %52 = dma.hbm_to_vmem [thread:$0]  %s1060_s2, 256, %s959_s30, [#allocation6], %s875_s13, %s875_s13, %s876_s14  }
  0x45   :  { %s879_s26 = smov [#allocation10]   ;;  %s880_s29 = smov [#allocation11]  }
  0x46   :  { %s70_s28 = sshll.u32 %s879_s26, 4  ;;  %s82_s8 = sshll.u32 %s880_s29, 4  ;;  %s71_s28 = int_to_ptr.vmem [resolvable:$true] %s70_s28  ;;  %s996_s8 = int_to_ptr.vmem [resolvable:$true] %s82_s8 }
  0x47   :  { %s797_s11 = scalar_lea.hbm %s1062_s4, 2048 }
  0x48   :  { %p798_p4 = scmp.ne.s32.totalorder %s1062_s4, %s797_s11  ;;  %p801_p5 = scmp.lt.u32.totalorder %s797_s11, %s1062_s4 }
  0x4a   :  { %p803_p6 = pnand %p801_p5, %p798_p4 }
  0x4c   :  { %806 = shalt.err (!%p803_p6)
}
  0x4d   :  { %s807_s2 = scalar_lea.vmem %s71_s28, 2048  ;;  %p812_p8 = scmp.lt.s32.totalorder %s71_s28, %s71_s28 }
  0x4e   :  { %p808_p7 = scmp.ne.s32.totalorder %s71_s28, %s807_s2  ;;  %p813_p9 = scmp.lt.s32.totalorder %s807_s2, %s807_s2 }
  0x50   :  { %p814_p10 = por %p813_p9, %p812_p8 }
  0x52   :  { %p815_p11 = pnand %p814_p10, %p808_p7 }
  0x54   :  { %818 = shalt.err (!%p815_p11)
}
  0x55   :  { %76 = dma.hbm_to_vmem [thread:$0]  %s1062_s4, 2048, %s71_s28, [#allocation9], %s875_s13, %s875_s13, %s876_s14  }
  0x56   :  { %s819_s19 = scalar_lea.hbm %s1063_s5, 2048 }
  0x57   :  { %p820_p12 = scmp.ne.s32.totalorder %s1063_s5, %s819_s19  ;;  %p823_p13 = scmp.lt.u32.totalorder %s819_s19, %s1063_s5 }
  0x59   :  { %p825_p0 = pnand %p823_p13, %p820_p12 }
  0x5b   :  { %828 = shalt.err (!%p825_p0)
}
  0x5c   :  { %s829_s24 = scalar_lea.vmem %s996_s8, 2048  ;;  %p834_p2 = scmp.lt.s32.totalorder %s996_s8, %s996_s8 }
  0x5d   :  { %p830_p1 = scmp.ne.s32.totalorder %s996_s8, %s829_s24  ;;  %p835_p3 = scmp.lt.s32.totalorder %s829_s24, %s829_s24 }
  0x5f   :  { %p836_p4 = por %p835_p3, %p834_p2 }
  0x61   :  { %p837_p5 = pnand %p836_p4, %p830_p1 }
  0x63   :  { %840 = shalt.err (!%p837_p5)
}
  0x64   :  { %88 = dma.hbm_to_vmem [thread:$0]  %s1063_s5, 2048, %s996_s8, [#allocation12], %s875_s13, %s875_s13, %s876_s14  }
  0x65   :  { %863 = dma.done.wait [#allocation3], 256  }
  0x66   :  { %864 = vsyncadd [#allocation3], 4294967040 }
  0x67   :  { %865 = dma.done.wait [#allocation6], 512  }
  0x68   :  { %866 = vsyncadd [#allocation6], 4294966784 }
  0x69   :  { %867 = dma.done.wait [#allocation9], 2304  }
  0x6a   :  { %868 = vsyncadd [#allocation9], 4294964992 }
  0x6b   :  { %869 = dma.done.wait [#allocation12], 2048  }
  0x6c   :  { %870 = vsyncadd [#allocation12], 4294965248  ;;  %vm119_vm0 = vcmask 130048   ;;  %v109_v0 = vld [vmem:[#allocation5] sm:$0xff]  ;;  %v111_v1 = vld [vmem:[#allocation2] sm:$0xff] }
  0x6d   :  { %v110_v2 = vld [vmem:[#allocation5 + $0x8] sm:$0xff]  ;;  %v112_v3 = vld [vmem:[#allocation2 + $0x8] sm:$0xff]  ;;  %v113_v4 = vmul.f32 8e-10, %v111_v1  ;;  %v117_v5 = vld [vmem:[#allocation7] sm:$0xff] }
  0x6e   :  { %v114_v6 = vmul.f32 8e-10, %v112_v3  ;;  %548 = vmatprep.mubr.msk.f32.mxu1 %vm119_vm0, %v117_v5  ;;  %v201_v8 = vld [vmem:[#allocation10] sm:$0xff]  ;;  %v202_v9 = vld [vmem:[#allocation10 + $0x8] sm:$0xff]  ;;  %v203_v13 = vld [vmem:[#allocation10 + $0x10] sm:$0xff] }
  0x6f   :  { %v115_v7 = vadd.f32 %v113_v4, %v109_v0  ;;  %v632_v12 = vpack.c.bf16 %v202_v9, %v201_v8  ;;  %v204_v14 = vld [vmem:[#allocation10 + $0x18] sm:$0xff]  ;;  %v118_v15 = vld [vmem:[#allocation7 + $0x8] sm:$0xff]  ;;  %v205_v17 = vld [vmem:[#allocation10 + $0x20] sm:$0xff] }
  0x70   :  { %v116_v10 = vadd.f32 %v114_v6, %v110_v2  ;;  %v636_v16 = vpack.c.bf16 %v204_v14, %v203_v13  ;;  %v206_v18 = vld [vmem:[#allocation10 + $0x28] sm:$0xff]  ;;  %v207_v20 = vld [vmem:[#allocation10 + $0x30] sm:$0xff]  ;;  %v208_v21 = vld [vmem:[#allocation10 + $0x38] sm:$0xff] }
  0x71   :  { %v640_v19 = vpack.c.bf16 %v206_v18, %v205_v17  ;;  %v644_v22 = vpack.c.bf16 %v208_v21, %v207_v20  ;;  %v209_v23 = vld [vmem:[#allocation10 + $0x40] sm:$0xff]  ;;  %v210_v24 = vld [vmem:[#allocation10 + $0x48] sm:$0xff]  ;;  %v211_v26 = vld [vmem:[#allocation10 + $0x50] sm:$0xff] }
  0x72   :  { %v628_v11 = vpack.c.bf16 %v116_v10, %v115_v7  ;;  %v648_v25 = vpack.c.bf16 %v210_v24, %v209_v23  ;;  %v212_v27 = vld [vmem:[#allocation10 + $0x58] sm:$0xff]  ;;  %v213_v29 = vld [vmem:[#allocation10 + $0x60] sm:$0xff]  ;;  %v214_v30 = vld [vmem:[#allocation10 + $0x68] sm:$0xff] }
  0x73   :  { %v652_v28 = vpack.c.bf16 %v212_v27, %v211_v26  ;;  %v656_v31 = vpack.c.bf16 %v214_v30, %v213_v29  ;;  %v215_v32 = vld [vmem:[#allocation10 + $0x70] sm:$0xff]  ;;  %v216_v33 = vld [vmem:[#allocation10 + $0x78] sm:$0xff]  ;;  %v293_v38 = vld [vmem:[%s1064_s6 + $0x8] sm:$0xff] }
  0x74   :  { %629 = vmatprep.subr.bf16.mxu1 %v628_v11  ;;  %v660_v34 = vpack.c.bf16 %v216_v33, %v215_v32  ;;  %v296_v37 = vld [vmem:[#allocation8] sm:$0xff]  ;;  %v292_v39 = vld [vmem:[%s1064_s6] sm:$0xff]  ;;  %v380_v44 = vld [vmem:[#allocation11 + $0x8] sm:$0xff]  ;;  %s881_s6 = smov [#allocation13]  }
  0x75   :  { %631 = vmatpush3.bf16.msra.mxu1 %v628_v11  ;;  %590 = vmatprep.mubr.msk.f32.mxu0 %vm119_vm0, %v296_v37  ;;  %v379_v43 = vld [vmem:[#allocation11] sm:$0xff]  ;;  %v381_v48 = vld [vmem:[#allocation11 + $0x10] sm:$0xff]  ;;  %v382_v49 = vld [vmem:[#allocation11 + $0x18] sm:$0xff]  ;;  %s481_s28 = sshll.u32 %s881_s6, 4  ;;  %s482_s28 = int_to_ptr.vmem [resolvable:$true] %s481_s28 }
  0x76   :  { %633 = vmatprep.subr.bf16.mxu1 %v632_v12  ;;  %v668_v47 = vpack.c.bf16 %v380_v44, %v379_v43  ;;  %v297_v50 = vld [vmem:[#allocation8 + $0x8] sm:$0xff]  ;;  %v672_v51 = vpack.c.bf16 %v382_v49, %v381_v48  ;;  %v383_v52 = vld [vmem:[#allocation11 + $0x20] sm:$0xff]  ;;  %v384_v53 = vld [vmem:[#allocation11 + $0x28] sm:$0xff]  ;;  %s841_s29 = scalar_lea.vmem %s482_s28, 256  ;;  %p846_p7 = scmp.lt.s32.totalorder %s482_s28, %s482_s28 }
  0x77   :  { %v676_v54 = vpack.c.bf16 %v384_v53, %v383_v52  ;;  %v385_v55 = vld [vmem:[#allocation11 + $0x30] sm:$0xff]  ;;  %v386_v56 = vld [vmem:[#allocation11 + $0x38] sm:$0xff]  ;;  %v387_v58 = vld [vmem:[#allocation11 + $0x40] sm:$0xff]  ;;  %p842_p6 = scmp.ne.s32.totalorder %s482_s28, %s841_s29  ;;  %p847_p8 = scmp.lt.s32.totalorder %s841_s29, %s841_s29 }
  0x78   :  { %549 = vmatmul.mubr.msk.f32.vlgmr.msra.gmra.mrb[0].mxu1 %vm119_vm0, %v118_v15  ;;  %v680_v57 = vpack.c.bf16 %v386_v56, %v385_v55  ;;  %v388_v59 = vld [vmem:[#allocation11 + $0x48] sm:$0xff]  ;;  %v389_v61 = vld [vmem:[#allocation11 + $0x50] sm:$0xff]  ;;  %v390_v62 = vld [vmem:[#allocation11 + $0x58] sm:$0xff] }
  0x79   :  { %635 = vmatpush3.bf16.msra.mxu1 %v632_v12  ;;  %v684_v60 = vpack.c.bf16 %v388_v59, %v387_v58  ;;  %v688_v63 = vpack.c.bf16 %v390_v62, %v389_v61  ;;  %v391_v0 = vld [vmem:[#allocation11 + $0x60] sm:$0xff]  ;;  %v392_v1 = vld [vmem:[#allocation11 + $0x68] sm:$0xff]  ;;  %v393_v3 = vld [vmem:[#allocation11 + $0x70] sm:$0xff]  ;;  %p848_p9 = por %p847_p8, %p846_p7 }
  0x7a   :  { %637 = vmatprep.subr.bf16.mxu1 %v636_v16  ;;  %v692_v2 = vpack.c.bf16 %v392_v1, %v391_v0  ;;  %v394_v4 = vld [vmem:[#allocation11 + $0x78] sm:$0xff] }
  0x7b   :  { %v696_v5 = vpack.c.bf16 %v394_v4, %v393_v3  ;;  %p849_p10 = pnand %p848_p9, %p842_p6 }
  0x7d   :  { %639 = vmatpush3.bf16.msra.mxu1 %v636_v16 }
  0x7e   :  { %641 = vmatprep.subr.bf16.mxu1 %v640_v19 }
  0x81   :  { %643 = vmatpush3.bf16.msra.mxu1 %v640_v19 }
  0x82   :  { %645 = vmatprep.subr.bf16.mxu1 %v644_v22 }
  0x85   :  { %647 = vmatpush3.bf16.msra.mxu1 %v644_v22 }
  0x86   :  { %649 = vmatprep.subr.bf16.mxu1 %v648_v25 }
  0x89   :  { %651 = vmatpush3.bf16.msra.mxu1 %v648_v25 }
  0x8a   :  { %653 = vmatprep.subr.bf16.mxu1 %v652_v28 }
  0x8d   :  { %655 = vmatpush3.bf16.msra.mxu1 %v652_v28 }
  0x8e   :  { %657 = vmatprep.subr.bf16.mxu1 %v656_v31 }
  0x91   :  { %659 = vmatpush3.bf16.msra.mxu1 %v656_v31 }
  0x92   :  { %661 = vmatprep.subr.bf16.mxu1 %v660_v34 }
  0x95   :  { %663 = vmatpush3.bf16.msra.mxu1 %v660_v34 }
 0x14b   :  { %v550_v35 = vpop.f32.mrb[0].mxu1 }
 0x14c   :  { %v192_v36 = vpop.f32.mrb[1].mxu1 }
 0x14d   :  { %583 = vmatprep.mubr.f32.mxu1 %v192_v36 }
 0x14e   :  { %584 = vmatmul.mubr.f32.vlgmr.msra.gmra.mrb[2].mxu1 %v550_v35 }
 0x221   :  { %v585_v40 = vpop.f32.mrb[2].mxu1 }
 0x222   :  { %v295_v41 = vmul.f32 %v585_v40, %v293_v38  ;;  %v283_v42 = vpop.f32.mrb[3].mxu1 }
 0x223   :  { %v294_v45 = vmul.f32 %v292_v39, %v283_v42 }
 0x225   :  { %v664_v46 = vpack.c.bf16 %v295_v41, %v294_v45 }
 0x227   :  { %665 = vmatprep.subr.bf16.mxu0 %v664_v46 }
 0x228   :  { %667 = vmatpush3.bf16.msra.mxu0 %v664_v46 }
 0x229   :  { %669 = vmatprep.subr.bf16.mxu0 %v668_v47 }
 0x22b   :  { %591 = vmatmul.mubr.msk.f32.vlgmr.msra.gmra.mrb[0].mxu0 %vm119_vm0, %v297_v50 }
 0x22c   :  { %671 = vmatpush3.bf16.msra.mxu0 %v668_v47 }
 0x22d   :  { %673 = vmatprep.subr.bf16.mxu0 %v672_v51 }
 0x230   :  { %675 = vmatpush3.bf16.msra.mxu0 %v672_v51 }
 0x231   :  { %677 = vmatprep.subr.bf16.mxu0 %v676_v54 }
 0x234   :  { %679 = vmatpush3.bf16.msra.mxu0 %v676_v54 }
 0x235   :  { %681 = vmatprep.subr.bf16.mxu0 %v680_v57 }
 0x238   :  { %683 = vmatpush3.bf16.msra.mxu0 %v680_v57 }
 0x239   :  { %685 = vmatprep.subr.bf16.mxu0 %v684_v60 }
 0x23c   :  { %687 = vmatpush3.bf16.msra.mxu0 %v684_v60 }
 0x23d   :  { %689 = vmatprep.subr.bf16.mxu0 %v688_v63 }
 0x240   :  { %691 = vmatpush3.bf16.msra.mxu0 %v688_v63 }
 0x241   :  { %693 = vmatprep.subr.bf16.mxu0 %v692_v2 }
 0x244   :  { %695 = vmatpush3.bf16.msra.mxu0 %v692_v2 }
 0x245   :  { %697 = vmatprep.subr.bf16.mxu0 %v696_v5 }
 0x248   :  { %699 = vmatpush3.bf16.msra.mxu0 %v696_v5 }
 0x2fe   :  { %v592_v6 = vpop.f32.mrb[0].mxu0 }
 0x2ff   :  { %v370_v7 = vpop.f32.mrb[1].mxu0 }
 0x300   :  { %625 = vmatprep.mubr.f32.mxu0 %v370_v7 }
 0x301   :  { %626 = vmatmul.mubr.f32.vlgmr.msra.gmra.mrb[2].mxu0 %v592_v6 }
 0x3d4   :  { %v627_v8 = vpop.f32.mrb[2].mxu0 }
 0x3d5   :  { %v471_v9 = vmax.f32 %v627_v8, 0.0  ;;  %v461_v10 = vpop.f32.mrb[3].mxu0 }
 0x3d6   :  { %v470_v11 = vmax.f32 %v461_v10, 0.0 }
 0x3d7   :  { %v473_v12 = vmin.f32 %v471_v9, 255.0 }
 0x3d8   :  { %v472_v13 = vmin.f32 %v470_v11, 255.0 }
 0x3d9   :  { %475 = vst [vmem:[#allocation13 + $0x8] sm:$0xff] %v473_v12 }
 0x3da   :  { %474 = vst [vmem:[#allocation13] sm:$0xff] %v472_v13 }
 0x3db   :  { %852 = shalt.err (!%p849_p10)
}
 0x3dc   :  { %s853_s10 = scalar_lea.hbm %s1065_s7, 256 }
 0x3dd   :  { %p854_p11 = scmp.ne.s32.totalorder %s1065_s7, %s853_s10  ;;  %p857_p12 = scmp.lt.u32.totalorder %s853_s10, %s1065_s7 }
 0x3df   :  { %p859_p13 = pnand %p857_p12, %p854_p11 }
 0x3e1   :  { %862 = shalt.err (!%p859_p13)
}
 0x3e2   :  { %487 = dma.vmem_to_hbm [thread:$0]  %s482_s28, 256, %s1065_s7, [#allocation4], %s875_s13, %s875_s13, %s876_s14  }
 0x3e3   :  { %871 = dma.done.wait [#allocation4], 256  }
 0x3e4   :  { %872 = vsyncadd [#allocation4], 4294967040 }
 0x3e5   :  { %491 = vsyncpa [#allocation3], 1 }
 0x3e6   :  { %492 = vsyncpa [#allocation6], 1 }
 0x3e7   :  { %493 = vsyncpa [#allocation9], 1 }
 0x3e8   :  { %494 = vsyncpa [#allocation12], 1 }
 0x3e9   :  { %495 = vsyncpa [#allocation4], 1 }

</bundles_post_ra>
